<compile_context>
chip_gen: v5e
topology: v5e:2x2
jax: 0.10.0
libtpu: 0.0.40
codegen_flags: <defaults>
</compile_context>

<pallas_src>
import functools

import jax
import jax.numpy as jnp
from jax.experimental import pallas as pl
from jax.experimental.pallas import tpu as pltpu


# ------------------------------------------------------------------- kernel --

def posterior_r_kernel(
    # batch-blocked input
    xh_ref,       # (TB, s+z+v+h)  = cat([s_prev, z_prev, v, h], 1)
    # resident parameters (constant index_map -> loaded once, kept in VMEM)
    wa_ref,       # (s+z+v+h, 3*z_dim)  [[Wp, 0], [0, W1h]] packed along out-axis
    ba_ref,       # (1, 3*z_dim)        [bp || b1]
    w1z_ref,      # (z_dim, 2*z_dim)    fc1, z-part of the folded concat
    wh_ref,       # (2*z_dim, 2*s_dim)  fc21 || fc22 packed along out-features
    bh_ref,       # (1, 2*s_dim)
    # batch-blocked output
    out_ref,      # (TB, z_dim + 2*s_dim) = z || loc || scale (split host-side)
    *, z_dim, s_dim, min_stddev,
):
    f32 = jnp.float32

    # ---- one dot for (prior trunk)  and  (fc1's h-contribution):
    #   a = [x || h] @ [[Wp, 0], [0, W1h]] + [bp || b1]
    #     = [ x@Wp + bp  ||  h@W1h + b1 ]
    a = jnp.dot(xh_ref[...], wa_ref[...], preferred_element_type=f32) + ba_ref[...]

    # z = prior.forward_shared(...) = relu(x @ Wp + bp)
    z = jnp.maximum(a[:, :z_dim], 0.0)
    # u = h @ W1h + b1   (fc1's h-part, bias already folded in)
    u = a[:, z_dim:]

    # ---- h1 = relu(fc1(cat([z, h], 1))) = relu(z @ W1z + u)
    h1 = jnp.maximum(
        jnp.dot(z, w1z_ref[...], preferred_element_type=f32) + u, 0.0)

    # ---- head = [fc21(h1) || fc22(h1)]  (single dot with packed head weights)
    head = jnp.dot(h1, wh_ref[...], preferred_element_type=f32) + bh_ref[...]

    # softplus(.) + min_stddev only on the scale half (lanes >= s_dim);
    # numerically stable softplus, matches F.softplus.
    sp = jnp.maximum(head, 0.0) + jnp.log1p(jnp.exp(-jnp.abs(head))) + min_stddev
    lane = jax.lax.broadcasted_iota(jnp.int32, head.shape, 1)
    head = jnp.where(lane >= s_dim, sp, head)

    # single dense store: [z || loc || scale]
    out_ref[...] = jnp.concatenate([z, head], axis=-1).astype(out_ref.dtype)


# ------------------------------------------------------------------ wrapper --

def _round_up(x, m):
    return ((x + m - 1) // m) * m


def _init_linear(key, fan_in, fan_out):
    # PyTorch nn.Linear default init: U(-1/sqrt(fan_in), 1/sqrt(fan_in))
    kw, kb = jax.random.split(key)
    bound = 1.0 / float(fan_in) ** 0.5
    w = jax.random.uniform(kw, (fan_in, fan_out), jnp.float32, -bound, bound)
    b = jax.random.uniform(kb, (1, fan_out), jnp.float32, -bound, bound)
    return w, b


def make_params(key, s_dim, z_dim, h_dim, v_dim):
    k1, k2, k3, k4 = jax.random.split(key, 4)
    # prior shared linear: (s_dim + z_dim + v_dim) -> z_dim
    wp, bp = _init_linear(k1, s_dim + z_dim + v_dim, z_dim)
    # fc1: (z_dim + h_dim) -> 2*z_dim   (split along the concat axis)
    w1, b1 = _init_linear(k2, z_dim + h_dim, 2 * z_dim)
    # fc21 / fc22: 2*z_dim -> s_dim     (packed along the output axis)
    w21, b21 = _init_linear(k3, 2 * z_dim, s_dim)
    w22, b22 = _init_linear(k4, 2 * z_dim, s_dim)
    return dict(
        wp=wp, bp=bp,
        w1z=w1[:z_dim], w1h=w1[z_dim:], b1=b1,
        w_head=jnp.concatenate([w21, w22], axis=1),
        b_head=jnp.concatenate([b21, b22], axis=1),
    )


def _pack_params(params, cat_dim, h_dim, z_dim):
    """Zero-pad + pack (prior trunk, fc1-h) into one weight/bias pair.

    Cheap (a few KB); if this forward is called inside a scan, hoist the packed
    arrays out and reuse them across steps.
    """
    wp, bp = params["wp"], params["bp"]
    w1h, b1 = params["w1h"], params["b1"]
    top = jnp.concatenate([wp, jnp.zeros((cat_dim, 2 * z_dim), jnp.float32)], axis=1)
    bot = jnp.concatenate([jnp.zeros((h_dim, z_dim), jnp.float32), w1h], axis=1)
    wa = jnp.concatenate([top, bot], axis=0)          # (cat+h, 3*z_dim)
    ba = jnp.concatenate([bp, b1], axis=1)            # (1, 3*z_dim)
    return wa, ba


def _pick_batch_tile(B, block_batch):
    """Batch tile: multiple of 8 (f32 sublane) or the full batch.

    Default targets large tiles (up to 4096 rows) — per row this kernel moves
    only a few hundred bytes, so the pipeline is step-overhead bound and bigger
    blocks are the main lever.  When B is large enough, force >=2 grid steps so
    v7x's two TensorCores both get work under dimension_semantics=("parallel",).
    """
    if block_batch is not None:
        tb = min(_round_up(max(int(block_batch), 1), 8), _round_up(B, 8))
    else:
        tb = min(_round_up(B, 8), 4096)
        if B >= 16 and pl.cdiv(B, tb) < 2:
            tb = _round_up(pl.cdiv(B, 2), 8)
    if tb >= B:
        tb = B          # full-extent block (legal even if B % 8 != 0)
    return tb


def posterior_r_forward(s_prev, z_prev, v, h, params, min_stddev=0.0,
                        block_batch=None):
    B = s_prev.shape[0]
    # Merging the four narrow inputs (total width s+z+v+h) is trivially cheap in
    # XLA and turns two blocked input streams + two dots into one of each.
    xh = jnp.concatenate([s_prev, z_prev, v, h], axis=1)

    cat_dim = s_prev.shape[1] + z_prev.shape[1] + v.shape[1]
    h_dim = h.shape[1]
    z_dim = params["wp"].shape[1]
    s_dim = params["w_head"].shape[1] // 2

    wa, ba = _pack_params(params, cat_dim, h_dim, z_dim)
    w1z, w_head, b_head = params["w1z"], params["w_head"], params["b_head"]

    tb = _pick_batch_tile(B, block_batch)
    grid = (pl.cdiv(B, tb),)

    feat_in = cat_dim + h_dim
    feat_out = z_dim + 2 * s_dim

    def blocked_spec(feat):
        return pl.BlockSpec((tb, feat), lambda i: (i, 0))

    def resident_spec(arr):  # constant block index -> loaded once, stays in VMEM
        return pl.BlockSpec(arr.shape, lambda i: (0, 0))

    # Explicit VMEM budget sized from the tile: 2x double-buffered in/out blocks
    # + resident weights + headroom, clamped to [16 MiB, 64 MiB] (v5e default is
    # only 16 MiB scoped; v7x physical VMEM is 64 MiB).
    stream_bytes = 4 * tb * (feat_in + feat_out)
    weight_bytes = 4 * (wa.size + ba.size + w1z.size + w_head.size + b_head.size)
    vmem_limit = int(min(64 << 20,
                         max(16 << 20, 4 * stream_bytes + weight_bytes + (4 << 20))))

    kernel = functools.partial(
        posterior_r_kernel, z_dim=z_dim, s_dim=s_dim,
        min_stddev=float(min_stddev))

    packed = pl.pallas_call(
        kernel,
        grid=grid,
        in_specs=[
            blocked_spec(feat_in),
            resident_spec(wa), resident_spec(ba),
            resident_spec(w1z), resident_spec(w_head), resident_spec(b_head),
        ],
        out_specs=pl.BlockSpec((tb, feat_out), lambda i: (i, 0)),
        out_shape=jax.ShapeDtypeStruct((B, feat_out), jnp.float32),
        compiler_params=pltpu.CompilerParams(
            dimension_semantics=("parallel",),   # v7x: split batch over 2 TCs
            vmem_limit_bytes=vmem_limit,
        ),
    )(xh, wa, ba, w1z, w_head, b_head)

    z = packed[:, :z_dim]
    loc = packed[:, z_dim:z_dim + s_dim]
    scale = packed[:, z_dim + s_dim:]
    return loc, scale, z


# ---------------------------------------------------------------- reference --

def posterior_r_reference(s_prev, z_prev, v, h, params, min_stddev=0.0):
    """Pure-JAX reference (mirrors the PyTorch forward)."""
    x = jnp.concatenate([s_prev, z_prev, v], axis=1)
    z = jax.nn.relu(x @ params["wp"] + params["bp"])
    w1 = jnp.concatenate([params["w1z"], params["w1h"]], axis=0)
    h1 = jax.nn.relu(jnp.concatenate([z, h], axis=1) @ w1 + params["b1"])
    head = h1 @ params["w_head"] + params["b_head"]
    s_dim = params["w_head"].shape[1] // 2
    loc = head[:, :s_dim]
    scale = jax.nn.softplus(head[:, s_dim:]) + min_stddev
    return loc, scale, z


if __name__ == "__main__":
    s_dim, z_dim, h_dim, v_dim = 8, 16, 32, 4
    min_stddev = 0.1

    key = jax.random.PRNGKey(0)
    kparams, kdata = jax.random.split(key)
    params = make_params(kparams, s_dim, z_dim, h_dim, v_dim)

    # (B=2, auto single full-extent block), (B=256, 64-row tile -> 4-step grid),
    # (B=100 with a non-multiple-of-8 requested tile -> rounded to 24, partial
    #  last block) — exercises the sublane-rounding fix.
    for B, tb in ((2, None), (256, 64), (100, 20)):
        ks, kz, kv, kh = jax.random.split(jax.random.fold_in(kdata, B), 4)
        s_prev = jax.random.normal(ks, (B, s_dim), jnp.float32)
        z_prev = jax.random.normal(kz, (B, z_dim), jnp.float32)
        v = jax.random.normal(kv, (B, v_dim), jnp.float32)
        h = jax.random.normal(kh, (B, h_dim), jnp.float32)

        loc, scale, z = posterior_r_forward(
            s_prev, z_prev, v, h, params, min_stddev, block_batch=tb)
        jax.block_until_ready((loc, scale, z))

        loc_r, scale_r, z_r = posterior_r_reference(
            s_prev, z_prev, v, h, params, min_stddev)
        assert jnp.allclose(loc, loc_r, atol=1e-5), f"loc mismatch (B={B})"
        assert jnp.allclose(scale, scale_r, atol=1e-5), f"scale mismatch (B={B})"
        assert jnp.allclose(z, z_r, atol=1e-5), f"z mismatch (B={B})"

    print("KERNEL_OK")
</pallas_src>

<mosaic_0001>
module attributes {stable_mosaic.version = 11 : i64} {
  func.func @posterior_r_kernel(%arg0: i32, %arg1: memref<2x60xf32, #tpu.memory_space<vmem>>, %arg2: memref<60x48xf32, #tpu.memory_space<vmem>>, %arg3: memref<1x48xf32, #tpu.memory_space<vmem>>, %arg4: memref<16x32xf32, #tpu.memory_space<vmem>>, %arg5: memref<32x16xf32, #tpu.memory_space<vmem>>, %arg6: memref<1x16xf32, #tpu.memory_space<vmem>>, %arg7: memref<2x32xf32, #tpu.memory_space<vmem>>) attributes {dimension_semantics = [#tpu.dimension_semantics<parallel>], iteration_bounds = array<i64: 1>, scalar_prefetch = 0 : i64, scratch_operands = 0 : i64, tpu.core_type = #tpu.core_type<tc>, window_params = [{transform_indices = @transform_0, window_bounds = array<i64: 2, 60>}, {pipeline_mode = #tpu.pipeline_mode<synchronous>, transform_indices = @transform_1, window_bounds = array<i64: 60, 48>}, {pipeline_mode = #tpu.pipeline_mode<synchronous>, transform_indices = @transform_2, window_bounds = array<i64: 1, 48>}, {pipeline_mode = #tpu.pipeline_mode<synchronous>, transform_indices = @transform_3, window_bounds = array<i64: 16, 32>}, {pipeline_mode = #tpu.pipeline_mode<synchronous>, transform_indices = @transform_4, window_bounds = array<i64: 32, 16>}, {pipeline_mode = #tpu.pipeline_mode<synchronous>, transform_indices = @transform_5, window_bounds = array<i64: 1, 16>}, {transform_indices = @transform_6, window_bounds = array<i64: 2, 32>}]} {
    %c0 = arith.constant 0 : index
    %c0_0 = arith.constant 0 : index
    %0 = vector.load %arg1[%c0, %c0_0] : memref<2x60xf32, #tpu.memory_space<vmem>>, vector<2x60xf32>
    %c0_1 = arith.constant 0 : index
    %c0_2 = arith.constant 0 : index
    %1 = vector.load %arg2[%c0_1, %c0_2] : memref<60x48xf32, #tpu.memory_space<vmem>>, vector<60x48xf32>
    %cst = arith.constant dense<0.000000e+00> : vector<2x48xf32>
    %2 = tpu.matmul %0, %1, %cst {dimension_numbers = #tpu.dot_dimension_numbers<[1], [0], [0], [1], [0, 0, 1, 1], [], []>} : vector<2x60xf32>, vector<60x48xf32>, vector<2x48xf32> -> vector<2x48xf32>
    %c0_3 = arith.constant 0 : index
    %c0_4 = arith.constant 0 : index
    %3 = vector.load %arg3[%c0_3, %c0_4] : memref<1x48xf32, #tpu.memory_space<vmem>>, vector<1x48xf32>
    %4 = vector.broadcast %3 : vector<1x48xf32> to vector<2x48xf32>
    %5 = arith.addf %2, %4 : vector<2x48xf32>
    %6 = vector.extract_strided_slice %5 {offsets = [0, 0], sizes = [2, 16], strides = [1, 1]} : vector<2x48xf32> to vector<2x16xf32>
    %cst_5 = arith.constant 0.000000e+00 : f32
    %7 = vector.broadcast %cst_5 : f32 to vector<2x16xf32>
    %8 = arith.maximumf %6, %7 : vector<2x16xf32>
    %9 = vector.extract_strided_slice %5 {offsets = [0, 16], sizes = [2, 32], strides = [1, 1]} : vector<2x48xf32> to vector<2x32xf32>
    %c0_6 = arith.constant 0 : index
    %c0_7 = arith.constant 0 : index
    %10 = vector.load %arg4[%c0_6, %c0_7] : memref<16x32xf32, #tpu.memory_space<vmem>>, vector<16x32xf32>
    %cst_8 = arith.constant dense<0.000000e+00> : vector<2x32xf32>
    %11 = tpu.matmul %8, %10, %cst_8 {dimension_numbers = #tpu.dot_dimension_numbers<[1], [0], [0], [1], [0, 0, 1, 1], [], []>} : vector<2x16xf32>, vector<16x32xf32>, vector<2x32xf32> -> vector<2x32xf32>
    %12 = arith.addf %11, %9 : vector<2x32xf32>
    %cst_9 = arith.constant 0.000000e+00 : f32
    %13 = vector.broadcast %cst_9 : f32 to vector<2x32xf32>
    %14 = arith.maximumf %12, %13 : vector<2x32xf32>
    %c0_10 = arith.constant 0 : index
    %c0_11 = arith.constant 0 : index
    %15 = vector.load %arg5[%c0_10, %c0_11] : memref<32x16xf32, #tpu.memory_space<vmem>>, vector<32x16xf32>
    %cst_12 = arith.constant dense<0.000000e+00> : vector<2x16xf32>
    %16 = tpu.matmul %14, %15, %cst_12 {dimension_numbers = #tpu.dot_dimension_numbers<[1], [0], [0], [1], [0, 0, 1, 1], [], []>} : vector<2x32xf32>, vector<32x16xf32>, vector<2x16xf32> -> vector<2x16xf32>
    %c0_13 = arith.constant 0 : index
    %c0_14 = arith.constant 0 : index
    %17 = vector.load %arg6[%c0_13, %c0_14] : memref<1x16xf32, #tpu.memory_space<vmem>>, vector<1x16xf32>
    %18 = vector.broadcast %17 : vector<1x16xf32> to vector<2x16xf32>
    %19 = arith.addf %16, %18 : vector<2x16xf32>
    %cst_15 = arith.constant 0.000000e+00 : f32
    %20 = vector.broadcast %cst_15 : f32 to vector<2x16xf32>
    %21 = arith.maximumf %19, %20 : vector<2x16xf32>
    %22 = math.absf %19 : vector<2x16xf32>
    %cst_16 = arith.constant 0.000000e+00 : f32
    %23 = vector.broadcast %cst_16 : f32 to vector<2x16xf32>
    %24 = arith.subf %23, %22 : vector<2x16xf32>
    %25 = math.exp %24 : vector<2x16xf32>
    %26 = math.log1p %25 : vector<2x16xf32>
    %27 = arith.addf %21, %26 : vector<2x16xf32>
    %cst_17 = arith.constant 1.000000e-01 : f32
    %28 = vector.broadcast %cst_17 : f32 to vector<2x16xf32>
    %29 = arith.addf %27, %28 : vector<2x16xf32>
    %30 = tpu.iota {dimensions = array<i32: 1>} : vector<2x16xi32>
    %c8_i32 = arith.constant 8 : i32
    %31 = vector.broadcast %c8_i32 : i32 to vector<2x16xi32>
    %32 = arith.cmpi sge, %30, %31 : vector<2x16xi32>
    %33 = arith.select %32, %29, %19 : vector<2x16xi1>, vector<2x16xf32>
    %34 = tpu.concatenate %8, %33 in 1 : vector<2x16xf32>, vector<2x16xf32> -> vector<2x32xf32>
    %c0_18 = arith.constant 0 : index
    %c0_19 = arith.constant 0 : index
    %35 = vector.load %arg7[%c0_18, %c0_19] : memref<2x32xf32, #tpu.memory_space<vmem>>, vector<2x32xf32>
    tpu.vector_store %arg7[%c0_18, %c0_19], %34 {strides = array<i32>} : memref<2x32xf32, #tpu.memory_space<vmem>>, vector<2x32xf32>,
    return
  }
  func.func @transform_0(%arg0: i32) -> (i32, i32) {
    %c0_i32 = arith.constant 0 : i32
    %c0_i32_0 = arith.constant 0 : i32
    return %arg0, %c0_i32 : i32, i32
  }
  func.func @transform_1(%arg0: i32) -> (i32, i32) {
    %c0_i32 = arith.constant 0 : i32
    %c0_i32_0 = arith.constant 0 : i32
    %c0_i32_1 = arith.constant 0 : i32
    return %c0_i32, %c0_i32_0 : i32, i32
  }
  func.func @transform_2(%arg0: i32) -> (i32, i32) {
    %c0_i32 = arith.constant 0 : i32
    %c0_i32_0 = arith.constant 0 : i32
    %c0_i32_1 = arith.constant 0 : i32
    return %c0_i32, %c0_i32_0 : i32, i32
  }
  func.func @transform_3(%arg0: i32) -> (i32, i32) {
    %c0_i32 = arith.constant 0 : i32
    %c0_i32_0 = arith.constant 0 : i32
    %c0_i32_1 = arith.constant 0 : i32
    return %c0_i32, %c0_i32_0 : i32, i32
  }
  func.func @transform_4(%arg0: i32) -> (i32, i32) {
    %c0_i32 = arith.constant 0 : i32
    %c0_i32_0 = arith.constant 0 : i32
    %c0_i32_1 = arith.constant 0 : i32
    return %c0_i32, %c0_i32_0 : i32, i32
  }
  func.func @transform_5(%arg0: i32) -> (i32, i32) {
    %c0_i32 = arith.constant 0 : i32
    %c0_i32_0 = arith.constant 0 : i32
    %c0_i32_1 = arith.constant 0 : i32
    return %c0_i32, %c0_i32_0 : i32, i32
  }
  func.func @transform_6(%arg0: i32) -> (i32, i32) {
    %c0_i32 = arith.constant 0 : i32
    %c0_i32_0 = arith.constant 0 : i32
    return %arg0, %c0_i32 : i32, i32
  }
}

</mosaic_0001>

<bundles_post_ra>
// kernel: tpu_custom_call.1
= control target key start
LH: loop header
LB: loop body
LE: loop exit
PB: predicated region body
PF: predicated region fallthrough
CT: control target
= control target key end

     0   :  { %vm41_vm0 = vcmask 1043456   ;;  %s305_s0 = inlined_call_operand.vmem [shape: f32[2,60], index: 0, kind: input, shape index: {}]   ;;  %s306_s1 = inlined_call_operand.vmem [shape: f32[60,48], index: 1, kind: input, shape index: {}]   ;;  %s307_s2 = inlined_call_operand.vmem [shape: f32[1,48], index: 2, kind: input, shape index: {}]   ;;  %s308_s3 = inlined_call_operand.vmem [shape: f32[16,32], index: 3, kind: input, shape index: {}]   ;;  %s309_s4 = inlined_call_operand.vmem [shape: f32[32,16], index: 4, kind: input, shape index: {}]   ;;  %s310_s5 = inlined_call_operand.vmem [shape: f32[1,16], index: 5, kind: input, shape index: {}]   ;;  %s311_s6 = inlined_call_operand.hbm [shape: f32[2,32], index: 6, kind: output, shape index: {}]  }
   0x1   :  { %v32_v0 = vld [vmem:[%s306_s1 + $0x38] sm:$0xf]  ;;  %v31_v1 = vld [vmem:[%s306_s1 + $0x30] sm:$0xff]  ;;  %v30_v2 = vld [vmem:[%s306_s1 + $0x28] sm:$0xff] }
   0x2   :  { %172 = vmatpush.msk.msra.mxu0 %vm41_vm0, %v32_v0  ;;  %v29_v3 = vld [vmem:[%s306_s1 + $0x20] sm:$0xff] }
   0x4   :  { %54 = vmatpush.msra.mxu0 %v31_v1 }
   0x5   :  { %11 = vsyncpa [#allocation3], 0  ;;  %v28_v4 = vld [vmem:[%s306_s1 + $0x18] sm:$0xff]  ;;  %v27_v5 = vld [vmem:[%s306_s1 + $0x10] sm:$0xff]  ;;  %vm37_vm1 = vcmask 490496   ;;  %vm72_vm2 = vcmask 130048   ;;  %v145_v33 = vlaneseq }
   0x6   :  { %55 = vmatpush.msra.mxu0 %v30_v2  ;;  %v26_v6 = vld [vmem:[%s306_s1 + $0x8] sm:$0xff]  ;;  %v25_v7 = vld [vmem:[%s306_s1] sm:$0xff]  ;;  %v100_v15 = vld [vmem:[%s309_s4 + $0x18] sm:$0xff]  ;;  %vm105_vm3 = vcmask 261120   ;;  %s163_s7 = sshll.u32 %s311_s6, 4  ;;  %vm154_vm6 = vcmask 254976   ;;  %s164_s7 = int_to_ptr.hbm [resolvable:$true] %s163_s7 }
   0x7   :  { %v24_v8 = vld [vmem:[%s305_s0] sm:$0x3]  ;;  %v67_v9 = vld [vmem:[%s308_s3 + $0x8] sm:$0xff]  ;;  %s211_s0 = smov 112   ;;  %121 = vmatpush.msra.mxu2 %v100_v15  ;;  %v99_v16 = vld [vmem:[%s309_s4 + $0x10] sm:$0xff]  ;;  %v146_v38 = vand.u32 127, %v145_v33 }
   0x8   :  { %56 = vmatpush.msra.mxu0 %v29_v3  ;;  %90 = vmatpush.msra.mxu1 %v67_v9  ;;  %v66_v10 = vld [vmem:[%s308_s3] sm:$0xff]  ;;  %v98_v17 = vld [vmem:[%s309_s4 + $0x8] sm:$0xff] }
   0x9   :  { %v179_v11 = vld [vmem:[%s307_s2] ss:$0 sm:$0xff]  ;;  %122 = vmatpush.msra.mxu2 %v99_v16  ;;  %vm147_vm5 = vcmp.ge.s32.totalorder %v146_v38, 8 }
   0xa   :  { %57 = vmatpush.msra.mxu0 %v28_v4  ;;  %91 = vmatpush.msra.mxu1 %v66_v10  ;;  %v97_v18 = vld [vmem:[%s309_s4] sm:$0xff]  ;;  %s212_s4 = smov 16  }
   0xb   :  { %123 = vmatpush.msra.mxu2 %v98_v17  ;;  %v180_v23 = vld [vmem:[%s310_s5] ss:$0 sm:$0xff]  ;;  %s213_s5 = smov [#allocation2]  }
   0xc   :  { %58 = vmatpush.msra.mxu0 %v27_v5  ;;  %s161_s28 = sshll.u32 %s213_s5, 4  ;;  %s162_s28 = int_to_ptr.vmem [resolvable:$true] %s161_s28 }
   0xd   :  { %124 = vmatpush.msra.mxu2 %v97_v18 }
   0xe   :  { %59 = vmatpush.msra.mxu0 %v26_v6 }
  0x10   :  { %60 = vmatpush.msra.mxu0 %v25_v7 }
  0x11   :  { %173 = vmatmul.msk.f32.vlgmr.msra.gmra.mxu0 %vm37_vm1, %v24_v8 }
  0x8e   :  { %v62_v12 = vpop.f32.mrf.mxu0 }
  0x8f   :  { %v63_v13 = vadd.f32 %v179_v11, %v62_v12 }
  0x91   :  { %v65_v14 = vmax.f32 %v63_v13, 0.0  ;;  %69 = vrot.lane.b32.xlu0 %v63_v13, %s211_s0 }
  0x93   :  { %174 = vmatmul.msk.f32.vlgmr.msra.gmra.mxu1 %vm72_vm2, %v65_v14 }
 0x103   :  { %v70_v19 = vpop.permute.xlu0 %69 }
 0x110   :  { %v93_v20 = vpop.f32.mrf.mxu1 }
 0x111   :  { %v94_v21 = vadd.f32 %v93_v20, %v70_v19 }
 0x113   :  { %v96_v22 = vmax.f32 %v94_v21, 0.0 }
 0x115   :  { %175 = vmatmul.msk.f32.vlgmr.msra.gmra.mxu2 %vm105_vm3, %v96_v22 }
 0x198   :  { %v126_v24 = vpop.f32.mrf.mxu2 }
 0x199   :  { %v127_v25 = vadd.f32 %v180_v23, %v126_v24 }
 0x19b   :  { %v130_v26 = vand.u32 2147483647, %v127_v25  ;;  %v129_v39 = vmax.f32 %v127_v25, 0.0 }
 0x19d   :  { %v131_v27 = vsub.f32 0.0, %v130_v26 }
 0x19f   :  { %v132_v28 = vmul.f32 1.442695, %v131_v27 }
 0x1a1   :  { %181 = vpow2.f32 %v132_v28 }
 0x1a7   :  { %v182_v29 = vpop.eup %181 }
 0x1a8   :  { %v134_v30 = vadd.f32 1.0, %v182_v29  ;;  %v137_v31 = vmul.f32 -0.5, %v182_v29  ;;  %v140_v34 = vand.u32 2147483647, %v182_v29 }
 0x1aa   :  { %183 = vlog2.f32 %v134_v30  ;;  %v138_v32 = vadd.f32 1.0, %v137_v31  ;;  %vm141_vm4 = vcmp.lt.f32.partialorder %v140_v34, 0.0004427343 }
 0x1ac   :  { %v139_v37 = vmul.f32 %v182_v29, %v138_v32 }
 0x1b0   :  { %v184_v35 = vpop.eup %183 }
 0x1b1   :  { %v136_v36 = vmul.f32 0.6931472, %v184_v35 }
 0x1b3   :  { %v142_v40 = vsel %vm141_vm4, %v139_v37, %v136_v36 }
 0x1b4   :  { %v143_v41 = vadd.f32 %v142_v40, %v129_v39 }
 0x1b6   :  { %v144_v42 = vadd.f32 0.1, %v143_v41 }
 0x1b8   :  { %v148_v43 = vsel %vm147_vm5, %v144_v42, %v127_v25 }
 0x1b9   :  { %150 = vrot.lane.b32.xlu0 %v148_v43, %s212_s4 }
 0x22b   :  { %v151_v44 = vpop.permute.xlu0 %150 }
 0x22c   :  { %v153_v45 = vsel %vm72_vm2, %v65_v14, %v151_v44 }
 0x22d   :  { %155 = vst.msk [vmem:[#allocation2] sm:$0x3] %vm154_vm6, %v153_v45 }
 0x22e   :  { %166 = dma.vmem_to_hbm [thread:$0]  %s162_s28, 32, %s164_s7, [#allocation3]  }
 0x22f   :  { %209 = dma.done.wait [#allocation3], 32  }
 0x230   :  { %210 = vsyncadd [#allocation3], 4294967264 }
 0x231   :  { %171 = vsyncpa [#allocation3], 1 }

</bundles_post_ra>
